<compile_context>
chip_gen: v7x
topology: tpu7x:2x2x1
jax: 0.10.0
libtpu: 0.0.40
codegen_flags: <defaults>
</compile_context>

<pallas_src>
import math
import functools

import numpy as np
import jax
import jax.numpy as jnp
from jax.experimental import pallas as pl
from jax.experimental.pallas import tpu as pltpu


# ---------------------------------------------------------------- kernel ----

def _posenc_add_kernel(x_ref, enc_ref, o_ref):
    # x_ref: (Rm, Cn), enc_ref: (1, Cn) -> broadcast add over the row axis.
    o_ref[...] = x_ref[...] + enc_ref[...]


# -------------------------------------------- sinusoidal table (== __init__) -

@functools.lru_cache(maxsize=None)
def _sinusoidal_table(max_len, d_model):
    """Host-side precompute of PositionalEncoding.__init__ (built once, cached)."""
    pos = np.arange(max_len, dtype=np.float32)[:, None]
    div = np.exp(np.arange(0, d_model, 2, dtype=np.float32)
                 * (-math.log(10000.0) / d_model))
    ang = pos * div
    enc = np.zeros((max_len, d_model), dtype=np.float32)
    enc[:, 0::2] = np.sin(ang)
    enc[:, 1::2] = np.cos(ang)[:, : d_model // 2]
    return jnp.asarray(enc)


# --------------------------------------------------------------- tiling -----

def _pick_tile(total, target, align):
    """Block size along one axis: the full extent if the axis is small enough
    (always a legal block shape), otherwise an `align`-multiple <= total.
    Ragged tails are handled by a cdiv grid + Pallas masking, so we never
    request an oversized block for shapes with no aligned divisor."""
    if total <= max(target, align):
        return total
    t = max(align, (target // align) * align)
    return min(t, (total // align) * align)


# --------------------------------------------------------------- wrapper ----

def positional_encoding_apply(x, enc, *, block_bytes=4 * 1024 * 1024,
                              col_tile=2048, donate_x=False):
    """x: (num_envs, batch, seq, d_model); enc: (seq, d_model). Returns x + enc."""
    E, B, S, D = x.shape
    assert enc.shape == (S, D)

    R, C = E * B, S * D
    itemsize = jnp.dtype(x.dtype).itemsize
    sub_align = max(8, 32 // itemsize)      # 8 for f32, 16 for bf16/f16, 32 for int8
    lane_align = 128

    x2 = x.reshape(R, C)
    # NOTE: enc is added in x.dtype; torch adds an f32 buffer (which would
    # upcast a bf16 x) — exact match for f32 inputs, tiny divergence for bf16.
    enc2 = enc.astype(x.dtype).reshape(1, C)

    # Lane (column) tile first, then rows sized so one block is ~block_bytes.
    Cn = _pick_tile(C, col_tile, lane_align)
    rows_target = max(1, block_bytes // max(1, Cn * itemsize))
    Rm = _pick_tile(R, rows_target, sub_align)

    grid_c = pl.cdiv(C, Cn)
    grid_r = pl.cdiv(R, Rm)

    # v7x megacore: make sure at least one "parallel" axis has >=2 blocks
    # when there is enough work to split (no-op on single-TC v5e/v6e).
    if grid_c == 1 and grid_r == 1 and R >= 2 * sub_align:
        half = -(-R // 2)
        Rm_split = ((half + sub_align - 1) // sub_align) * sub_align
        if Rm_split < R:
            Rm = Rm_split
            grid_r = pl.cdiv(R, Rm)

    # Explicit VMEM budget: double-buffered x-in, y-out and enc blocks,
    # with headroom, capped well under v7x's 64 MiB physical VMEM.
    need = 2 * (2 * Rm * Cn + Cn) * itemsize
    vmem_limit = int(min(max(2 * need, 32 << 20), 48 << 20))

    cost = pl.CostEstimate(flops=R * C, transcendentals=0,
                           bytes_accessed=(2 * R * C + S * D) * itemsize)

    y2 = pl.pallas_call(
        _posenc_add_kernel,
        out_shape=jax.ShapeDtypeStruct((R, C), x.dtype),
        # Row axis innermost -> the enc block index (0, j) is constant across
        # the inner loop, so the tiny (1, Cn) enc slab is not re-DMA'd per step.
        grid=(grid_c, grid_r),
        in_specs=[pl.BlockSpec((Rm, Cn), lambda j, i: (i, j)),
                  pl.BlockSpec((1, Cn), lambda j, i: (0, j))],
        out_specs=pl.BlockSpec((Rm, Cn), lambda j, i: (i, j)),
        compiler_params=pltpu.CompilerParams(
            dimension_semantics=("parallel", "parallel"),
            vmem_limit_bytes=vmem_limit),
        cost_estimate=cost,
        # Optional donation for callers that don't reuse x (halves peak HBM
        # footprint); off by default to avoid XLA copy-insertion when x is live.
        input_output_aliases=({0: 0} if donate_x else {}),
    )(x2, enc2)

    return y2.reshape(E, B, S, D)


_jitted_apply = jax.jit(positional_encoding_apply,
                        static_argnames=("block_bytes", "col_tile", "donate_x"))


class PositionalEncoding:
    """JAX/Pallas equivalent of the torch module (table precomputed in __init__)."""

    def __init__(self, d_model, max_len=5000):
        self.d_model = d_model
        self.max_len = max_len
        self.encoding = _sinusoidal_table(max_len, d_model)   # (max_len, d_model) f32

    def __call__(self, x):
        E, B, S, D = x.shape
        if S > self.max_len:
            raise ValueError("seq_len exceeds max_len")
        enc = self.encoding[:S, :D]
        return _jitted_apply(x, enc)


# ------------------------------------------------------- pure-JAX reference -

def ref_forward(x, max_len=5000):
    E, B, S, D = x.shape
    enc = _sinusoidal_table(max_len, D)[:S]
    return x + enc[None, None, :, :].astype(x.dtype)


# -------------------------------------------------------------------- main --

if __name__ == "__main__":
    num_envs, batch, seq_len, d_model = 2, 4, 8, 32

    key = jax.random.PRNGKey(0)
    x = jax.random.normal(key, (num_envs, batch, seq_len, d_model), jnp.float32)

    pe = PositionalEncoding(d_model, max_len=5000)
    y = jax.block_until_ready(pe(x))

    y_ref = jax.block_until_ready(ref_forward(x))
    np.testing.assert_allclose(np.asarray(y), np.asarray(y_ref),
                               rtol=1e-6, atol=1e-6)
    print("KERNEL_OK")
</pallas_src>

<mosaic_0001>
module attributes {stable_mosaic.version = 11 : i64} {
  func.func @_posenc_add_kernel(%arg0: i32, %arg1: i32, %arg2: memref<8x256xf32, #tpu.memory_space<vmem>>, %arg3: memref<1x256xf32, #tpu.memory_space<vmem>>, %arg4: memref<8x256xf32, #tpu.memory_space<vmem>>) attributes {dimension_semantics = [#tpu.dimension_semantics<parallel>, #tpu.dimension_semantics<parallel>], iteration_bounds = array<i64: 1, 1>, scalar_prefetch = 0 : i64, scratch_operands = 0 : i64, tpu.core_type = #tpu.core_type<tc>, window_params = [{transform_indices = @transform_0, window_bounds = array<i64: 8, 256>}, {transform_indices = @transform_1, window_bounds = array<i64: 1, 256>}, {transform_indices = @transform_2, window_bounds = array<i64: 8, 256>}]} {
    %c0 = arith.constant 0 : index
    %c0_0 = arith.constant 0 : index
    %0 = vector.load %arg2[%c0, %c0_0] : memref<8x256xf32, #tpu.memory_space<vmem>>, vector<8x256xf32>
    %c0_1 = arith.constant 0 : index
    %c0_2 = arith.constant 0 : index
    %1 = vector.load %arg3[%c0_1, %c0_2] : memref<1x256xf32, #tpu.memory_space<vmem>>, vector<1x256xf32>
    %2 = vector.broadcast %1 : vector<1x256xf32> to vector<8x256xf32>
    %3 = arith.addf %0, %2 : vector<8x256xf32>
    %c0_3 = arith.constant 0 : index
    %c0_4 = arith.constant 0 : index
    %4 = vector.load %arg4[%c0_3, %c0_4] : memref<8x256xf32, #tpu.memory_space<vmem>>, vector<8x256xf32>
    tpu.vector_store %arg4[%c0_3, %c0_4], %3 {strides = array<i32>} : memref<8x256xf32, #tpu.memory_space<vmem>>, vector<8x256xf32>,
    return
  }
  func.func @transform_0(%arg0: i32, %arg1: i32) -> (i32, i32) {
    %c0_i32 = arith.constant 0 : i32
    return %arg1, %arg0 : i32, i32
  }
  func.func @transform_1(%arg0: i32, %arg1: i32) -> (i32, i32) {
    %c0_i32 = arith.constant 0 : i32
    %c0_i32_0 = arith.constant 0 : i32
    return %c0_i32, %arg0 : i32, i32
  }
  func.func @transform_2(%arg0: i32, %arg1: i32) -> (i32, i32) {
    %c0_i32 = arith.constant 0 : i32
    return %arg1, %arg0 : i32, i32
  }
}

</mosaic_0001>

<bundles_post_ra>
// kernel: positional_encoding_apply.1
= control target key start
LH: loop header
LB: loop body
LE: loop exit
PB: predicated region body
PF: predicated region fallthrough
CT: control target
= control target key end

     0   :  { %v15_v0 = vlaneseq  ;;  %s63_s1 = inlined_call_operand.vmem [shape: f32[1,256], index: 1, kind: input, shape index: {}]   ;;  %s64_s0 = inlined_call_operand.vmem [shape: f32[8,256], index: 0, kind: input, shape index: {}]   ;;  %s65_s2 = inlined_call_operand.vmem [shape: f32[8,256], index: 2, kind: output, shape index: {}]  }
   0x1   :  { %v13_v2 = vld [vmem:[%s63_s1] sm:$0x3]  ;;  %v12_v6 = vld [vmem:[%s64_s0 + $0x8] sm:$0xff] }
   0x2   :  { %v16_v1 = vshrl.u32 %v15_v0, 7  ;;  %v11_v5 = vld [vmem:[%s64_s0] sm:$0xff] }
   0x4   :  { %v17_v3 = vsub.s32 0, %v16_v1  ;;  %v21_v4 = vsub.s32 1, %v16_v1 }
   0x6   :  { %v18_v7 = vrot.slane %v13_v2, %v17_v3  ;;  %v22_v8 = vrot.slane %v13_v2, %v21_v4 }
   0x8   :  { %v25_v9 = vadd.f32 %v18_v7, %v11_v5  ;;  %v26_v10 = vadd.f32 %v22_v8, %v12_v6 }
   0xa   :  { %27 = vst [vmem:[%s65_s2] sm:$0xff] %v25_v9  ;;  %28 = vst [vmem:[%s65_s2 + $0x8] sm:$0xff] %v26_v10 }

</bundles_post_ra>
